<compile_context>
chip_gen: v7x
topology: tpu7x:2x2x1
jax: 0.10.0
libtpu: 0.0.40
codegen_flags: <defaults>
</compile_context>

<pallas_src>
import functools

import jax
import jax.numpy as jnp
from jax.experimental import pallas as pl
from jax.experimental.pallas import tpu as pltpu


def _round_up(x, m):
    return ((x + m - 1) // m) * m


# ---------------------------------------------------------------------------
# Kernel: fused actor+critic MLP, bf16 MXU operands, f32 math, bf16 output slab
# ---------------------------------------------------------------------------
def _fused_actor_critic_kernel(x_ref, w_ref, b_ref, o_ref, *,
                               obs_pad, out_pad, action_dim):
    # x: (TB, obs_pad) f32   w: (3, D, D) bf16   b: (3, 1, D) f32   o: (TB, out_pad)
    f32 = jnp.float32
    bf16 = jnp.bfloat16

    x = x_ref[...].astype(bf16)

    # layer 1: fused [actor | critic] Linear + ReLU (bf16 operands, f32 accumulate)
    h = jnp.dot(x, w_ref[0, :obs_pad, :], preferred_element_type=f32) + b_ref[0]
    h = jnp.maximum(h, 0.0)

    # layer 2: block-diagonal fused Linear + ReLU
    h = jnp.dot(h.astype(bf16), w_ref[1], preferred_element_type=f32) + b_ref[1]
    h = jnp.maximum(h, 0.0)

    # layer 3: block-diagonal heads — only the first out_pad (128-aligned) lanes
    # hold mu / value, so the matmul N, the tanh and the writeback stop there.
    z = (jnp.dot(h.astype(bf16), w_ref[2, :, :out_pad], preferred_element_type=f32)
         + b_ref[2, :, :out_pad])

    #   cols [0, action_dim) -> actor output (tanh applied)
    #   col  action_dim      -> critic value (identity)
    #   remaining padded cols are exactly zero (zero weights / zero bias)
    col = jax.lax.broadcasted_iota(jnp.int32, (1, out_pad), 1)   # (1, out_pad) mask
    o_ref[...] = jnp.where(col < action_dim, jnp.tanh(z), z).astype(o_ref.dtype)


# ---------------------------------------------------------------------------
# Parameter packing (done once at init, not per call)
# ---------------------------------------------------------------------------
def pack_params(actor_params, critic_params):
    """Fuse + pad PyTorch-style per-layer params into two slabs for the kernel."""
    (aW1, ab1), (aW2, ab2), (aW3, ab3) = actor_params
    (cW1, cb1), (cW2, cb2), (cW3, cb3) = critic_params

    obs_dim, H1 = aW1.shape
    H2 = aW2.shape[1]
    action_dim = aW3.shape[1]
    assert cW1.shape == (obs_dim, H1)
    assert cW2.shape == (H1, H2)
    assert cW3.shape == (H2, 1)

    # 16 keeps the bf16 weight sublane slice clean; round to 128 once obs_dim
    # exceeds a lane group so the x layout stays unmasked.
    obs_pad = _round_up(obs_dim, 16) if obs_dim <= 128 else _round_up(obs_dim, 128)
    d_pad = _round_up(max(obs_pad, 2 * H1, 2 * H2, action_dim + 1), 128)
    out_pad = _round_up(action_dim + 1, 128)          # lane-dense output width

    w = jnp.zeros((3, d_pad, d_pad), jnp.float32)
    b = jnp.zeros((3, 1, d_pad), jnp.float32)

    # layer 1: (obs_dim, 2*H1) = [aW1 | cW1]
    w = w.at[0, :obs_dim, :H1].set(aW1)
    w = w.at[0, :obs_dim, H1:2 * H1].set(cW1)
    b = b.at[0, 0, :H1].set(ab1.reshape(-1))
    b = b.at[0, 0, H1:2 * H1].set(cb1.reshape(-1))

    # layer 2: block-diagonal (2*H1, 2*H2)
    w = w.at[1, :H1, :H2].set(aW2)
    w = w.at[1, H1:2 * H1, H2:2 * H2].set(cW2)
    b = b.at[1, 0, :H2].set(ab2.reshape(-1))
    b = b.at[1, 0, H2:2 * H2].set(cb2.reshape(-1))

    # layer 3: block-diagonal heads (2*H2, action_dim + 1)
    w = w.at[2, :H2, :action_dim].set(aW3)
    w = w.at[2, H2:2 * H2, action_dim:action_dim + 1].set(cW3)
    b = b.at[2, 0, :action_dim].set(ab3.reshape(-1))
    b = b.at[2, 0, action_dim:action_dim + 1].set(cb3.reshape(-1))

    # bf16 weight slab: MXU-native operands, half the resident VMEM / DMA.
    # Biases stay f32 (added to the f32 accumulator).
    w = w.astype(jnp.bfloat16)

    meta = dict(obs_dim=obs_dim, obs_pad=obs_pad, action_dim=action_dim,
                d_pad=d_pad, out_pad=out_pad)
    return w, b, meta


# ---------------------------------------------------------------------------
# Batch tiling: multiple of 16 (bf16 output sublanes); aim for >=2 grid steps
# so the "parallel" batch axis can shard across both TensorCores on v7x.
# ---------------------------------------------------------------------------
def _choose_batch_tile(B, tb_max):
    B16 = _round_up(B, 16)
    half = _round_up((B16 + 1) // 2, 16)
    return max(16, min(tb_max, half))


# ---------------------------------------------------------------------------
# Forward wrapper
# ---------------------------------------------------------------------------
def actor_critic_forward(x, packed, log_std, *, tb_max=1024, out_dtype=jnp.bfloat16):
    """Returns (mu, std, value) — the parameters of Normal(mu, std) and the value."""
    w_slab, b_slab, meta = packed
    obs_dim, obs_pad = meta["obs_dim"], meta["obs_pad"]
    action_dim, d_pad, out_pad = meta["action_dim"], meta["d_pad"], meta["out_pad"]

    B = x.shape[0]
    if obs_pad != obs_dim:  # pad feature axis (zeros are inert w.r.t. the packed weights)
        x = jnp.pad(x, ((0, 0), (0, obs_pad - obs_dim)))

    TB = _choose_batch_tile(B, tb_max)
    Bp = _round_up(B, TB)
    # NOTE: for production rollouts pick batch sizes that are multiples of TB so
    # this pad (an extra HBM pass over x) is skipped entirely.
    if Bp != B:
        x = jnp.pad(x, ((0, Bp - B), (0, 0)))

    kernel = functools.partial(
        _fused_actor_critic_kernel,
        obs_pad=obs_pad, out_pad=out_pad, action_dim=action_dim,
    )

    out = pl.pallas_call(
        kernel,
        out_shape=jax.ShapeDtypeStruct((Bp, out_pad), out_dtype),
        grid_spec=pl.GridSpec(
            grid=(Bp // TB,),
            in_specs=[
                pl.BlockSpec((TB, obs_pad), lambda i: (i, 0)),          # x: tiled over batch
                pl.BlockSpec((3, d_pad, d_pad), lambda i: (0, 0, 0)),   # weights: resident (bf16)
                pl.BlockSpec((3, 1, d_pad), lambda i: (0, 0, 0)),       # biases: resident (f32)
            ],
            out_specs=pl.BlockSpec((TB, out_pad), lambda i: (i, 0)),    # lane-dense output
        ),
        compiler_params=pltpu.CompilerParams(
            dimension_semantics=("parallel",),   # shards batch tiles over TCs on v7x
        ),
    )(x, w_slab, b_slab)

    # These slices (and the f32 cast) fuse into downstream consumers (sampling /
    # log_prob / losses); casting back to f32 preserves the module's interface.
    mu = out[:B, :action_dim].astype(jnp.float32)
    value = out[:B, action_dim:action_dim + 1].astype(jnp.float32)
    # std = exp(log_std).expand_as(mu) — input-independent, computed outside kernel.
    std = jnp.broadcast_to(jnp.exp(log_std), mu.shape)
    return mu, std, value


# ---------------------------------------------------------------------------
# Init (PyTorch nn.Linear-style) and pure-JAX f32 reference
# ---------------------------------------------------------------------------
def _init_linear(key, fan_in, fan_out):
    """PyTorch nn.Linear init: U(-1/sqrt(fan_in), 1/sqrt(fan_in)); W pre-transposed."""
    kw, kb = jax.random.split(key)
    bound = 1.0 / jnp.sqrt(jnp.float32(fan_in))
    W = jax.random.uniform(kw, (fan_in, fan_out), jnp.float32, -bound, bound)
    b = jax.random.uniform(kb, (1, fan_out), jnp.float32, -bound, bound)
    return W, b


def make_params(key, obs_dim, hidden_sizes, action_dim, std=0.0):
    sizes = [obs_dim] + list(hidden_sizes)
    actor_sizes = sizes + [action_dim]
    critic_sizes = sizes + [1]

    keys = jax.random.split(key, len(actor_sizes) - 1 + len(critic_sizes) - 1)
    k_iter = iter(keys)

    actor_params = [
        _init_linear(next(k_iter), actor_sizes[j], actor_sizes[j + 1])
        for j in range(len(actor_sizes) - 1)
    ]
    critic_params = [
        _init_linear(next(k_iter), critic_sizes[j], critic_sizes[j + 1])
        for j in range(len(critic_sizes) - 1)
    ]
    log_std = jnp.ones((1, action_dim), jnp.float32) * std
    return actor_params, critic_params, log_std


def _reference_forward(x, actor_params, critic_params, log_std):
    def mlp(params, h):
        for i, (W, b) in enumerate(params):
            h = h @ W + b
            if i < len(params) - 1:
                h = jnp.maximum(h, 0.0)
        return h

    value = mlp(critic_params, x)
    mu = jnp.tanh(mlp(actor_params, x))
    std = jnp.broadcast_to(jnp.exp(log_std), mu.shape)
    return mu, std, value


if __name__ == "__main__":
    # Box-action-space-like configuration:
    #   observation_space.shape[0] = 16, hidden sizes = [32, 32], action_dim = 4
    obs_dim, hidden, action_dim = 16, [32, 32], 4

    key = jax.random.PRNGKey(0)
    k_params, k_x1, k_x2 = jax.random.split(key, 3)

    actor_params, critic_params, log_std = make_params(
        k_params, obs_dim, hidden, action_dim, std=0.0
    )
    packed = pack_params(actor_params, critic_params)  # one-time fusion/padding (bf16 weights)

    # --- small spec-sized batch --------------------------------------------
    batch = 2
    x = jax.random.normal(k_x1, (batch, obs_dim), jnp.float32)
    mu, std, value = actor_critic_forward(x, packed, log_std)
    jax.block_until_ready((mu, std, value))

    assert mu.shape == (batch, action_dim)
    assert std.shape == (batch, action_dim)
    assert value.shape == (batch, 1)

    mu_ref, std_ref, value_ref = _reference_forward(x, actor_params, critic_params, log_std)
    # bf16 MXU operands + bf16 output storage => compare against the f32
    # reference with bf16-appropriate tolerances.
    assert jnp.allclose(mu, mu_ref, rtol=5e-2, atol=5e-2)
    assert jnp.allclose(std, std_ref, rtol=1e-6, atol=1e-6)
    assert jnp.allclose(value, value_ref, rtol=5e-2, atol=5e-2)

    # --- larger batch exercises the multi-step "parallel" grid (2 TCs on v7x)
    batch2 = 64
    x2 = jax.random.normal(k_x2, (batch2, obs_dim), jnp.float32)
    mu2, std2, value2 = actor_critic_forward(x2, packed, log_std)
    jax.block_until_ready((mu2, std2, value2))
    mu2_ref, _, value2_ref = _reference_forward(x2, actor_params, critic_params, log_std)
    assert mu2.shape == (batch2, action_dim) and value2.shape == (batch2, 1)
    assert jnp.allclose(mu2, mu2_ref, rtol=5e-2, atol=5e-2)
    assert jnp.allclose(value2, value2_ref, rtol=5e-2, atol=5e-2)

    # TODO(synk): Normal(mu, std) sampling / log_prob (get_action / get_log_prob)
    # lives outside the kernel; the kernel returns the distribution parameters.
    print("KERNEL_OK")
</pallas_src>

<mosaic_0001>
module attributes {stable_mosaic.version = 11 : i64} {
  func.func @_fused_actor_critic_kernel(%arg0: i32, %arg1: memref<16x16xf32, #tpu.memory_space<vmem>>, %arg2: memref<3x128x128xbf16, #tpu.memory_space<vmem>>, %arg3: memref<3x1x128xf32, #tpu.memory_space<vmem>>, %arg4: memref<16x128xbf16, #tpu.memory_space<vmem>>) attributes {dimension_semantics = [#tpu.dimension_semantics<parallel>], iteration_bounds = array<i64: 1>, scalar_prefetch = 0 : i64, scratch_operands = 0 : i64, tpu.core_type = #tpu.core_type<tc>, window_params = [{transform_indices = @transform_0, window_bounds = array<i64: 16, 16>}, {pipeline_mode = #tpu.pipeline_mode<synchronous>, transform_indices = @transform_1, window_bounds = array<i64: 3, 128, 128>}, {pipeline_mode = #tpu.pipeline_mode<synchronous>, transform_indices = @transform_2, window_bounds = array<i64: 3, 1, 128>}, {transform_indices = @transform_3, window_bounds = array<i64: 16, 128>}]} {
    %c0 = arith.constant 0 : index
    %c0_0 = arith.constant 0 : index
    %0 = vector.load %arg1[%c0, %c0_0] : memref<16x16xf32, #tpu.memory_space<vmem>>, vector<16x16xf32>
    %1 = arith.truncf %0 : vector<16x16xf32> to vector<16x16xbf16>
    %c0_1 = arith.constant 0 : index
    %c0_2 = arith.constant 0 : index
    %c0_3 = arith.constant 0 : index
    %2 = vector.load %arg2[%c0_1, %c0_2, %c0_3] : memref<3x128x128xbf16, #tpu.memory_space<vmem>>, vector<1x16x128xbf16>
    %3 = vector.shape_cast %2 : vector<1x16x128xbf16> to vector<16x128xbf16>
    %cst = arith.constant dense<0.000000e+00> : vector<16x128xf32>
    %4 = tpu.matmul %1, %3, %cst {dimension_numbers = #tpu.dot_dimension_numbers<[1], [0], [0], [1], [0, 0, 1, 1], [], []>} : vector<16x16xbf16>, vector<16x128xbf16>, vector<16x128xf32> -> vector<16x128xf32>
    %c0_4 = arith.constant 0 : index
    %c0_5 = arith.constant 0 : index
    %c0_6 = arith.constant 0 : index
    %5 = vector.load %arg3[%c0_4, %c0_5, %c0_6] : memref<3x1x128xf32, #tpu.memory_space<vmem>>, vector<1x1x128xf32>
    %6 = vector.shape_cast %5 : vector<1x1x128xf32> to vector<1x128xf32>
    %7 = vector.broadcast %6 : vector<1x128xf32> to vector<16x128xf32>
    %8 = arith.addf %4, %7 : vector<16x128xf32>
    %cst_7 = arith.constant 0.000000e+00 : f32
    %9 = vector.broadcast %cst_7 : f32 to vector<16x128xf32>
    %10 = arith.maximumf %8, %9 : vector<16x128xf32>
    %11 = arith.truncf %10 : vector<16x128xf32> to vector<16x128xbf16>
    %c1 = arith.constant 1 : index
    %c0_8 = arith.constant 0 : index
    %c0_9 = arith.constant 0 : index
    %12 = vector.load %arg2[%c1, %c0_8, %c0_9] : memref<3x128x128xbf16, #tpu.memory_space<vmem>>, vector<1x128x128xbf16>
    %13 = vector.shape_cast %12 : vector<1x128x128xbf16> to vector<128x128xbf16>
    %cst_10 = arith.constant dense<0.000000e+00> : vector<16x128xf32>
    %14 = tpu.matmul %11, %13, %cst_10 {dimension_numbers = #tpu.dot_dimension_numbers<[1], [0], [0], [1], [0, 0, 1, 1], [], []>} : vector<16x128xbf16>, vector<128x128xbf16>, vector<16x128xf32> -> vector<16x128xf32>
    %c1_11 = arith.constant 1 : index
    %c0_12 = arith.constant 0 : index
    %c0_13 = arith.constant 0 : index
    %15 = vector.load %arg3[%c1_11, %c0_12, %c0_13] : memref<3x1x128xf32, #tpu.memory_space<vmem>>, vector<1x1x128xf32>
    %16 = vector.shape_cast %15 : vector<1x1x128xf32> to vector<1x128xf32>
    %17 = vector.broadcast %16 : vector<1x128xf32> to vector<16x128xf32>
    %18 = arith.addf %14, %17 : vector<16x128xf32>
    %cst_14 = arith.constant 0.000000e+00 : f32
    %19 = vector.broadcast %cst_14 : f32 to vector<16x128xf32>
    %20 = arith.maximumf %18, %19 : vector<16x128xf32>
    %21 = arith.truncf %20 : vector<16x128xf32> to vector<16x128xbf16>
    %c2 = arith.constant 2 : index
    %c0_15 = arith.constant 0 : index
    %c0_16 = arith.constant 0 : index
    %22 = vector.load %arg2[%c2, %c0_15, %c0_16] : memref<3x128x128xbf16, #tpu.memory_space<vmem>>, vector<1x128x128xbf16>
    %23 = vector.shape_cast %22 : vector<1x128x128xbf16> to vector<128x128xbf16>
    %cst_17 = arith.constant dense<0.000000e+00> : vector<16x128xf32>
    %24 = tpu.matmul %21, %23, %cst_17 {dimension_numbers = #tpu.dot_dimension_numbers<[1], [0], [0], [1], [0, 0, 1, 1], [], []>} : vector<16x128xbf16>, vector<128x128xbf16>, vector<16x128xf32> -> vector<16x128xf32>
    %c2_18 = arith.constant 2 : index
    %c0_19 = arith.constant 0 : index
    %c0_20 = arith.constant 0 : index
    %25 = vector.load %arg3[%c2_18, %c0_19, %c0_20] : memref<3x1x128xf32, #tpu.memory_space<vmem>>, vector<1x1x128xf32>
    %26 = vector.shape_cast %25 : vector<1x1x128xf32> to vector<1x128xf32>
    %27 = vector.broadcast %26 : vector<1x128xf32> to vector<16x128xf32>
    %28 = arith.addf %24, %27 : vector<16x128xf32>
    %29 = tpu.iota {dimensions = array<i32: 1>} : vector<1x128xi32>
    %c4_i32 = arith.constant 4 : i32
    %30 = vector.broadcast %c4_i32 : i32 to vector<1x128xi32>
    %31 = arith.cmpi slt, %29, %30 : vector<1x128xi32>
    %32 = math.tanh %28 : vector<16x128xf32>
    %33 = vector.shape_cast %31 : vector<1x128xi1> to vector<1x128xi1>
    %34 = vector.broadcast %33 : vector<1x128xi1> to vector<16x128xi1>
    %35 = arith.select %34, %32, %28 : vector<16x128xi1>, vector<16x128xf32>
    %36 = arith.truncf %35 : vector<16x128xf32> to vector<16x128xbf16>
    %c0_21 = arith.constant 0 : index
    %c0_22 = arith.constant 0 : index
    %37 = vector.load %arg4[%c0_21, %c0_22] : memref<16x128xbf16, #tpu.memory_space<vmem>>, vector<16x128xbf16>
    tpu.vector_store %arg4[%c0_21, %c0_22], %36 {strides = array<i32>} : memref<16x128xbf16, #tpu.memory_space<vmem>>, vector<16x128xbf16>,
    return
  }
  func.func @transform_0(%arg0: i32) -> (i32, i32) {
    %c0_i32 = arith.constant 0 : i32
    %c0_i32_0 = arith.constant 0 : i32
    return %arg0, %c0_i32 : i32, i32
  }
  func.func @transform_1(%arg0: i32) -> (i32, i32, i32) {
    %c0_i32 = arith.constant 0 : i32
    %c0_i32_0 = arith.constant 0 : i32
    %c0_i32_1 = arith.constant 0 : i32
    %c0_i32_2 = arith.constant 0 : i32
    return %c0_i32, %c0_i32_0, %c0_i32_1 : i32, i32, i32
  }
  func.func @transform_2(%arg0: i32) -> (i32, i32, i32) {
    %c0_i32 = arith.constant 0 : i32
    %c0_i32_0 = arith.constant 0 : i32
    %c0_i32_1 = arith.constant 0 : i32
    %c0_i32_2 = arith.constant 0 : i32
    return %c0_i32, %c0_i32_0, %c0_i32_1 : i32, i32, i32
  }
  func.func @transform_3(%arg0: i32) -> (i32, i32) {
    %c0_i32 = arith.constant 0 : i32
    %c0_i32_0 = arith.constant 0 : i32
    return %arg0, %c0_i32 : i32, i32
  }
}

</mosaic_0001>

<bundles_post_ra>
// kernel: tpu_custom_call.1
= control target key start
LH: loop header
LB: loop body
LE: loop exit
PB: predicated region body
PF: predicated region fallthrough
CT: control target
= control target key end

     0   :  { %8 = vsyncpa [#allocation3], 0  ;;  %s681_s0 = inlined_call_operand.hbm [shape: f32[16,16], index: 0, kind: input, shape index: {}]   ;;  %s682_s1 = inlined_call_operand.hbm [shape: bf16[3,128,128], index: 1, kind: input, shape index: {}]   ;;  %s683_s2 = inlined_call_operand.vmem [shape: f32[3,1,128], index: 2, kind: input, shape index: {}]   ;;  %s684_s3 = inlined_call_operand.hbm [shape: bf16[16,128], index: 3, kind: output, shape index: {}]  }
   0x1   :  { %9 = vsyncpa [#allocation6], 0 }
   0x2   :  { %10 = vsyncpa [#allocation4], 0  ;;  %s578_s12 = smov [#allocation2]   ;;  %s506_s16 = scalar_lea.hbm %s681_s0, 256 }
   0x3   :  { %s16_s13 = sshll.u32 %s578_s12, 4  ;;  %p507_p0 = scmp.ne.s32.totalorder %s681_s0, %s506_s16  ;;  %s17_s13 = int_to_ptr.vmem [resolvable:$true] %s16_s13 }
   0x4   :  { %p510_p1 = scmp.lt.u32.totalorder %s506_s16, %s681_s0 }
   0x6   :  { %p512_p2 = pnand %p510_p1, %p507_p0 }
   0x8   :  { %515 = shalt.err (!%p512_p2)
}
   0x9   :  { %s516_s21 = scalar_lea.vmem %s17_s13, 256  ;;  %p521_p4 = scmp.lt.s32.totalorder %s17_s13, %s17_s13 }
   0xa   :  { %p517_p3 = scmp.ne.s32.totalorder %s17_s13, %s516_s21  ;;  %p522_p5 = scmp.lt.s32.totalorder %s516_s21, %s516_s21 }
   0xc   :  { %p523_p6 = por %p522_p5, %p521_p4 }
   0xe   :  { %p524_p7 = pnand %p523_p6, %p517_p3 }
  0x10   :  { %527 = shalt.err (!%p524_p7)
}
  0x11   :  { %s579_s22 = smov 128   ;;  %s580_s23 = smov 8  }
  0x12   :  { %22 = dma.hbm_to_vmem [thread:$0]  %s681_s0, 256, %s17_s13, [#allocation3], %s579_s22, %s579_s22, %s580_s23  }
  0x13   :  { %s581_s26 = smov [#allocation5]   ;;  %s528_s30 = scalar_lea.hbm %s682_s1, 3072 }
  0x14   :  { %s28_s27 = sshll.u32 %s581_s26, 4  ;;  %p529_p8 = scmp.ne.s32.totalorder %s682_s1, %s528_s30  ;;  %s29_s27 = int_to_ptr.vmem [resolvable:$true] %s28_s27 }
  0x15   :  { %p532_p9 = scmp.lt.u32.totalorder %s528_s30, %s682_s1 }
  0x17   :  { %p534_p10 = pnand %p532_p9, %p529_p8 }
  0x19   :  { %537 = shalt.err (!%p534_p10)
}
  0x1a   :  { %s538_s8 = scalar_lea.vmem %s29_s27, 3072  ;;  %p543_p12 = scmp.lt.s32.totalorder %s29_s27, %s29_s27 }
  0x1b   :  { %p539_p11 = scmp.ne.s32.totalorder %s29_s27, %s538_s8  ;;  %p544_p13 = scmp.lt.s32.totalorder %s538_s8, %s538_s8 }
  0x1d   :  { %p545_p0 = por %p544_p13, %p543_p12 }
  0x1f   :  { %p546_p1 = pnand %p545_p0, %p539_p11 }
  0x21   :  { %549 = shalt.err (!%p546_p1)
}
  0x22   :  { %s582_s0 = smov 64   ;;  %s583_s9 = smov 4  }
  0x23   :  { %34 = dma.hbm_to_vmem [thread:$0]  %s682_s1, 3072, %s29_s27, [#allocation6], %s582_s0, %s582_s0, %s583_s9  }
  0x24   :  { %572 = dma.done.wait [#allocation3], 256  }
  0x25   :  { %573 = vsyncadd [#allocation3], 4294967040 }
  0x26   :  { %574 = dma.done.wait [#allocation6], 3072  }
  0x27   :  { %575 = vsyncadd [#allocation6], 4294964224  ;;  %v584_v0 = vmov 0.0   ;;  %vm585_vm0 = vmmov 0   ;;  %v485_v1 = vld [vmem:[#allocation5] sm:$0xff]   ;;  %v44_v2 = vld [vmem:[#allocation2] sm:$0xff]  ;;  %v341_v48 = vlaneseq }
  0x28   :  { %430 = vmatprep.subr.bf16.mxu0 %v584_v0  ;;  %432 = vmatprep.mubr.msk.bf16.mxu0 %vm585_vm0, %v584_v0  ;;  %v45_v3 = vld [vmem:[#allocation2 + $0x8] sm:$0xff]  ;;  %vm62_vm1 = vcmask 130048   ;;  %v486_v5 = vld [vmem:[#allocation5 + $0x40] sm:$0xff]   ;;  %v487_v6 = vld [vmem:[#allocation5 + $0x48] sm:$0xff]   ;;  %s586_s17 = smov [#allocation7]  }
  0x29   :  { %436 = vmatprep.subr.bf16.mxu1 %v584_v0  ;;  %452 = vmatprep.mubr.msk.bf16.mxu1 %vm585_vm0, %v584_v0  ;;  %v46_v4 = vpack.c.bf16 %v45_v3, %v44_v2  ;;  %v488_v7 = vld [vmem:[#allocation5 + $0x50] sm:$0xff]   ;;  %v489_v8 = vld [vmem:[#allocation5 + $0x58] sm:$0xff]   ;;  %v490_v9 = vld [vmem:[#allocation5 + $0x60] sm:$0xff]   ;;  %v342_v49 = vand.u32 127, %v341_v48  ;;  %s365_s18 = sshll.u32 %s586_s17, 4  ;;  %s366_s18 = int_to_ptr.vmem [resolvable:$true] %s365_s18 }
  0x2a   :  { %431 = vmatpush3.bf16.msra.mxu0 %v485_v1  ;;  %437 = vmatpush3.bf16.msra.mxu1 %v486_v5  ;;  %v491_v10 = vld [vmem:[#allocation5 + $0x68] sm:$0xff]   ;;  %v492_v11 = vld [vmem:[#allocation5 + $0x70] sm:$0xff]   ;;  %v493_v12 = vld [vmem:[#allocation5 + $0x78] sm:$0xff]   ;;  %p555_p3 = scmp.lt.s32.totalorder %s366_s18, %s366_s18 }
  0x2b   :  { %456 = vmatprep.subr.bf16.mxu0 %v584_v0  ;;  %438 = vmatprep.subr.bf16.mxu1 %v584_v0  ;;  %v494_v13 = vld [vmem:[#allocation5 + $0x80] sm:$0xff]   ;;  %v495_v14 = vld [vmem:[#allocation5 + $0x88] sm:$0xff]   ;;  %v496_v15 = vld [vmem:[#allocation5 + $0x90] sm:$0xff]   ;;  %vm343_vm2 = vcmp.lt.s32.totalorder %v342_v49, 4 }
  0x2c   :  { %v497_v16 = vld [vmem:[#allocation5 + $0x98] sm:$0xff]   ;;  %v498_v17 = vld [vmem:[#allocation5 + $0xa0] sm:$0xff]   ;;  %v499_v18 = vld [vmem:[#allocation5 + $0xa8] sm:$0xff]  }
  0x2d   :  { %433 = vmatmul.mubr.msk.bf16.vlgmr.msra.gmra.mrb[0].mxu0 %vm62_vm1, %v46_v4  ;;  %v378_v19 = vld [vmem:[%s683_s2] ss:$0 sm:$0xff]  ;;  %v501_v30 = vld [vmem:[#allocation5 + $0xb8] sm:$0xff]   ;;  %v382_v31 = vld [vmem:[%s683_s2 + $0x1] ss:$0 sm:$0xff] }
  0x2e   :  { %472 = vmatprep.mubr.msk.bf16.mxu0 %vm585_vm0, %v584_v0  ;;  %439 = vmatpush3.bf16.msra.mxu1 %v487_v6  ;;  %v500_v29 = vld [vmem:[#allocation5 + $0xb0] sm:$0xff]  }
  0x2f   :  { %440 = vmatprep.subr.bf16.mxu1 %v584_v0  ;;  %457 = vmatpush3.bf16.msra.mxu0 %v494_v13  ;;  %v392_v41 = vld [vmem:[%s683_s2 + $0x2] ss:$0 sm:$0xff]  ;;  %s550_s2 = scalar_lea.vmem %s366_s18, 128 }
  0x30   :  { %458 = vmatprep.subr.bf16.mxu0 %v584_v0  ;;  %p551_p2 = scmp.ne.s32.totalorder %s366_s18, %s550_s2  ;;  %p556_p4 = scmp.lt.s32.totalorder %s550_s2, %s550_s2 }
  0x32   :  { %441 = vmatpush3.bf16.msra.mxu1 %v488_v7  ;;  %p557_p5 = por %p556_p4, %p555_p3 }
  0x33   :  { %442 = vmatprep.subr.bf16.mxu1 %v584_v0  ;;  %459 = vmatpush3.bf16.msra.mxu0 %v495_v14 }
  0x34   :  { %460 = vmatprep.subr.bf16.mxu0 %v584_v0  ;;  %p558_p6 = pnand %p557_p5, %p551_p2 }
  0x36   :  { %443 = vmatpush3.bf16.msra.mxu1 %v489_v8 }
  0x37   :  { %444 = vmatprep.subr.bf16.mxu1 %v584_v0  ;;  %461 = vmatpush3.bf16.msra.mxu0 %v496_v15 }
  0x38   :  { %462 = vmatprep.subr.bf16.mxu0 %v584_v0 }
  0x3a   :  { %445 = vmatpush3.bf16.msra.mxu1 %v490_v9 }
  0x3b   :  { %446 = vmatprep.subr.bf16.mxu1 %v584_v0  ;;  %463 = vmatpush3.bf16.msra.mxu0 %v497_v16 }
  0x3c   :  { %464 = vmatprep.subr.bf16.mxu0 %v584_v0 }
  0x3e   :  { %447 = vmatpush3.bf16.msra.mxu1 %v491_v10 }
  0x3f   :  { %448 = vmatprep.subr.bf16.mxu1 %v584_v0  ;;  %465 = vmatpush3.bf16.msra.mxu0 %v498_v17 }
  0x40   :  { %466 = vmatprep.subr.bf16.mxu0 %v584_v0 }
  0x42   :  { %449 = vmatpush3.bf16.msra.mxu1 %v492_v11 }
  0x43   :  { %450 = vmatprep.subr.bf16.mxu1 %v584_v0  ;;  %467 = vmatpush3.bf16.msra.mxu0 %v499_v18 }
  0x44   :  { %468 = vmatprep.subr.bf16.mxu0 %v584_v0 }
  0x46   :  { %451 = vmatpush3.bf16.msra.mxu1 %v493_v12 }
  0x47   :  { %469 = vmatpush3.bf16.msra.mxu0 %v500_v29 }
  0x48   :  { %470 = vmatprep.subr.bf16.mxu0 %v584_v0 }
  0x4b   :  { %471 = vmatpush3.bf16.msra.mxu0 %v501_v30 }
 0x100   :  { %v100_v20 = vpop.f32.mrb[0].mxu0 }
 0x101   :  { %v101_v21 = vadd.f32 %v378_v19, %v100_v20  ;;  %v434_v22 = vpop.f32.mrb[1].mxu0 }
 0x102   :  { %v103_v23 = vpop.f32.mrb[2].mxu0 }
 0x103   :  { %v104_v24 = vadd.f32 %v378_v19, %v103_v23  ;;  %v435_v25 = vpop.f32.mrb[3].mxu0  ;;  %v107_v26 = vmax.f32 %v101_v21, 0.0 }
 0x105   :  { %v108_v27 = vmax.f32 %v104_v24, 0.0 }
 0x107   :  { %v109_v28 = vpack.c.bf16 %v108_v27, %v107_v26 }
 0x109   :  { %453 = vmatmul.mubr.bf16.vlgmr.msra.gmra.mrb[0].mxu1 %v109_v28 }
 0x1dc   :  { %v217_v32 = vpop.f32.mrb[0].mxu1 }
 0x1dd   :  { %v218_v33 = vadd.f32 %v382_v31, %v217_v32  ;;  %v454_v34 = vpop.f32.mrb[1].mxu1 }
 0x1de   :  { %v220_v35 = vpop.f32.mrb[2].mxu1 }
 0x1df   :  { %v221_v36 = vadd.f32 %v382_v31, %v220_v35  ;;  %v455_v37 = vpop.f32.mrb[3].mxu1  ;;  %v224_v38 = vmax.f32 %v218_v33, 0.0 }
 0x1e1   :  { %v225_v39 = vmax.f32 %v221_v36, 0.0 }
 0x1e3   :  { %v226_v40 = vpack.c.bf16 %v225_v39, %v224_v38 }
 0x1e5   :  { %473 = vmatmul.mubr.bf16.vlgmr.msra.gmra.mrb[4].mxu0 %v226_v40 }
 0x2b8   :  { %v334_v42 = vpop.f32.mrb[4].mxu0 }
 0x2b9   :  { %v335_v43 = vadd.f32 %v392_v41, %v334_v42  ;;  %v474_v44 = vpop.f32.mrb[5].mxu0 }
 0x2ba   :  { %v337_v45 = vpop.f32.mrb[6].mxu0 }
 0x2bb   :  { %502 = vtanh.f32 %v335_v43  ;;  %v338_v46 = vadd.f32 %v392_v41, %v337_v45  ;;  %v475_v47 = vpop.f32.mrb[7].mxu0 }
 0x2bd   :  { %504 = vtanh.f32 %v338_v46 }
 0x2c5   :  { %v503_v50 = vpop.eup %502 }
 0x2c6   :  { %v348_v52 = vsel %vm343_vm2, %v503_v50, %v335_v43 }
 0x2c7   :  { %v505_v51 = vpop.eup %504 }
 0x2c8   :  { %v349_v53 = vsel %vm343_vm2, %v505_v51, %v338_v46 }
 0x2c9   :  { %v408_v54 = vpack.c.bf16 %v349_v53, %v348_v52 }
 0x2cb   :  { %409 = vst [vmem:[#allocation7] sm:$0xff] %v408_v54  }
 0x2cc   :  { %561 = shalt.err (!%p558_p6)
}
 0x2cd   :  { %s562_s21 = scalar_lea.hbm %s684_s3, 128 }
 0x2ce   :  { %p563_p7 = scmp.ne.s32.totalorder %s684_s3, %s562_s21  ;;  %p566_p8 = scmp.lt.u32.totalorder %s562_s21, %s684_s3 }
 0x2d0   :  { %p568_p9 = pnand %p566_p8, %p563_p7 }
 0x2d2   :  { %571 = shalt.err (!%p568_p9)
}
 0x2d3   :  { %371 = dma.vmem_to_hbm [thread:$0]  %s366_s18, 128, %s684_s3, [#allocation4], %s582_s0, %s582_s0, %s583_s9  }
 0x2d4   :  { %576 = dma.done.wait [#allocation4], 128  }
 0x2d5   :  { %577 = vsyncadd [#allocation4], 4294967168 }
 0x2d6   :  { %375 = vsyncpa [#allocation3], 1 }
 0x2d7   :  { %376 = vsyncpa [#allocation6], 1 }
 0x2d8   :  { %377 = vsyncpa [#allocation4], 1 }

</bundles_post_ra>
